<compile_context>
chip_gen: v6e
topology: v6e:2x2x1
jax: 0.10.0
libtpu: 0.0.40
codegen_flags: <defaults>
</compile_context>

<pallas_src>
import math

import jax
import jax.numpy as jnp
from jax.experimental import pallas as pl
from jax.experimental.pallas import tpu as pltpu


# Cap chosen so the double-buffered x+out streams stay <= ~32 MiB (v7x-safe: 64 MiB VMEM).
_TB_CAP = 262144
# Per-lane VMEM cost of one stream buffer after sublane padding (dtype independent):
#   f32: 8 sublanes * 4 B == bf16: 16 sublanes * 2 B == 32 B.
_BYTES_PER_LANE_PER_BUF = 32


def _ceil_div(a, b):
    return -(-a // b)


def _round_up(a, m):
    return _ceil_div(a, m) * m


def mlp_kernel(x_ref, w1_ref, b1_ref, w2_ref, b2_ref, o_ref):
    # x_ref : (D_in, TB)    w1_ref: (D_h, D_in)   b1_ref: (D_h, 1)  f32
    # w2_ref: (D_out, D_h)  b2_ref: (D_out, 1) f32   o_ref: (D_out, TB)
    x = x_ref[...]
    w1 = w1_ref[...]
    w2 = w2_ref[...]
    # fc1 + ReLU: (D_h, D_in) @ (D_in, TB) -> (D_h, TB), f32 accumulation on the MXU.
    h = jnp.dot(w1, x, preferred_element_type=jnp.float32)
    h = jnp.maximum(h + b1_ref[...], 0.0)                     # f32 bias, f32 ReLU
    # fc2: (D_out, D_h) @ (D_h, TB) -> (D_out, TB).  Cast h to the weight dtype so a
    # bf16 model uses the bf16 MXU path; with f32 weights the cast is a no-op.
    out = jnp.dot(w2, h.astype(w2.dtype), preferred_element_type=jnp.float32)
    out = out + b2_ref[...]                                   # f32 bias
    o_ref[...] = out.astype(o_ref.dtype)


def _pick_tile(batch, tb):
    """Pick a lane tile size: large (overhead-amortizing), 128-multiple when tiling,
    capped for v7x VMEM, and split in two when a single tile would strand a TC."""
    tb = max(1, min(tb, _TB_CAP))
    if tb >= batch:
        if batch >= 512:
            # Whole batch would be one tile: split into two 128-multiple tiles so the
            # "parallel" batch axis gives both v7x TensorCores work.
            tb = _round_up(_ceil_div(batch, 2), 128)
        else:
            tb = batch                       # single full-extent block (always legal)
    else:
        tb = _round_up(tb, 128)              # multi-tile path must be lane-aligned
        if tb >= batch:
            tb = batch
    return tb


def simple_model_forward_t(x_t, w1, b1, w2, b2, *, tb=131072):
    """Preferred, relayout-free entry point (batch on lanes).

    x_t: (D_in, B) activations.
    w1:  (D_h, D_in),  b1: (D_h,)   -- PyTorch nn.Linear layout (out_features, in_features).
    w2:  (D_out, D_h), b2: (D_out,)
    Returns (D_out, B) in the input dtype.
    """
    d_in, batch = x_t.shape
    d_h = w1.shape[0]
    d_out = w2.shape[0]

    tb = _pick_tile(batch, tb)
    grid = (_ceil_div(batch, tb),)

    # Biases pre-cast to f32 once in the wrapper -> no per-step casts in the kernel.
    b1c = b1.reshape(d_h, 1).astype(jnp.float32)
    b2c = b2.reshape(d_out, 1).astype(jnp.float32)

    # VMEM budget: double-buffered x + out streams (sublane padding included) + headroom.
    stream_bytes = 2 * 2 * _BYTES_PER_LANE_PER_BUF * tb       # 2 tensors * 2 buffers
    vmem_limit = min(48 * 1024 * 1024,
                     max(32 * 1024 * 1024, stream_bytes + (4 << 20)))

    itemsize = jnp.dtype(x_t.dtype).itemsize
    cost = pl.CostEstimate(
        flops=2 * batch * (d_in * d_h + d_h * d_out),
        transcendentals=0,
        bytes_accessed=batch * (d_in + d_out) * itemsize
        + (w1.size + b1.size) * jnp.dtype(w1.dtype).itemsize
        + (w2.size + b2.size) * jnp.dtype(w2.dtype).itemsize,
    )

    return pl.pallas_call(
        mlp_kernel,
        out_shape=jax.ShapeDtypeStruct((d_out, batch), x_t.dtype),
        grid=grid,
        in_specs=[
            pl.BlockSpec((d_in, tb), lambda i: (0, i)),     # x: batch streamed on lanes
            pl.BlockSpec((d_h, d_in), lambda i: (0, 0)),    # w1: resident in VMEM
            pl.BlockSpec((d_h, 1), lambda i: (0, 0)),       # b1 (f32): resident
            pl.BlockSpec((d_out, d_h), lambda i: (0, 0)),   # w2: resident
            pl.BlockSpec((d_out, 1), lambda i: (0, 0)),     # b2 (f32): resident
        ],
        out_specs=pl.BlockSpec((d_out, tb), lambda i: (0, i)),
        compiler_params=pltpu.CompilerParams(
            dimension_semantics=("parallel",),              # batch tiles shard across v7x TCs
            vmem_limit_bytes=vmem_limit,
        ),
        cost_estimate=cost,
    )(x_t, w1, b1c, w2, b2c)


def simple_model_forward(x, w1, b1, w2, b2, *, tb=131072):
    """PyTorch-layout compatibility wrapper: x (B, D_in) -> (B, D_out).

    SLOW PATH: the two transposes re-read/re-write every activation byte in XLA and
    typically cost more than the kernel itself.  For peak throughput keep activations
    in (D_in, B)/(D_out, B) layout end-to-end and call simple_model_forward_t directly.
    """
    out_t = simple_model_forward_t(x.T, w1, b1, w2, b2, tb=tb)
    return out_t.T


def init_params(key, dtype=jnp.float32):
    # nn.Linear default init: U(-1/sqrt(fan_in), 1/sqrt(fan_in)); PyTorch (out, in) layout.
    k1, k2, k3, k4 = jax.random.split(key, 4)
    bound1 = 1.0 / math.sqrt(3.0)
    bound2 = 1.0 / math.sqrt(16.0)
    w1 = jax.random.uniform(k1, (16, 3), dtype, -bound1, bound1)
    b1 = jax.random.uniform(k2, (16,), dtype, -bound1, bound1)
    w2 = jax.random.uniform(k3, (2, 16), dtype, -bound2, bound2)
    b2 = jax.random.uniform(k4, (2,), dtype, -bound2, bound2)
    return w1, b1, w2, b2


if __name__ == "__main__":
    key = jax.random.PRNGKey(0)
    kx, kp = jax.random.split(key)

    w1, b1, w2, b2 = init_params(kp)

    # --- preferred relayout-free path: activations already in (D_in, B) layout -------
    B = 8
    x_t = jax.random.normal(kx, (3, B), jnp.float32)
    out_t = jax.block_until_ready(simple_model_forward_t(x_t, w1, b1, w2, b2))
    ref_t = w2 @ jnp.maximum(w1 @ x_t + b1[:, None], 0.0) + b2[:, None]
    assert out_t.shape == (2, B)
    assert jnp.allclose(out_t, ref_t, atol=1e-5, rtol=1e-5)

    # --- PyTorch-layout compatibility wrapper (pays transposes; parity check only) ---
    x = x_t.T
    out = jax.block_until_ready(simple_model_forward(x, w1, b1, w2, b2))
    ref = jnp.maximum(x @ w1.T + b1, 0.0) @ w2.T + b2
    assert out.shape == (B, 2)
    assert jnp.allclose(out, ref, atol=1e-5, rtol=1e-5)

    # --- bf16 multi-tile run exercising the lane-dense grid + megacore split path ----
    B2 = 1024
    xt2 = jax.random.normal(jax.random.PRNGKey(1), (3, B2), jnp.float32)
    bf = lambda a: a.astype(jnp.bfloat16)
    out2 = jax.block_until_ready(
        simple_model_forward_t(bf(xt2), bf(w1), bf(b1), bf(w2), bf(b2), tb=256))
    rb = lambda a: a.astype(jnp.bfloat16).astype(jnp.float32)
    ref2 = rb(w2) @ jnp.maximum(rb(w1) @ rb(xt2) + rb(b1)[:, None], 0.0) + rb(b2)[:, None]
    assert out2.shape == (2, B2)
    assert jnp.allclose(out2.astype(jnp.float32), ref2, atol=5e-2, rtol=5e-2)

    print("KERNEL_OK")
</pallas_src>

<mosaic_0001>
module attributes {stable_mosaic.version = 11 : i64} {
  func.func @mlp_kernel(%arg0: i32, %arg1: memref<3x8xf32, #tpu.memory_space<vmem>>, %arg2: memref<16x3xf32, #tpu.memory_space<vmem>>, %arg3: memref<16x1xf32, #tpu.memory_space<vmem>>, %arg4: memref<2x16xf32, #tpu.memory_space<vmem>>, %arg5: memref<2x1xf32, #tpu.memory_space<vmem>>, %arg6: memref<2x8xf32, #tpu.memory_space<vmem>>) attributes {dimension_semantics = [#tpu.dimension_semantics<parallel>], iteration_bounds = array<i64: 1>, scalar_prefetch = 0 : i64, scratch_operands = 0 : i64, tpu.core_type = #tpu.core_type<tc>, window_params = [{transform_indices = @transform_0, window_bounds = array<i64: 3, 8>}, {pipeline_mode = #tpu.pipeline_mode<synchronous>, transform_indices = @transform_1, window_bounds = array<i64: 16, 3>}, {pipeline_mode = #tpu.pipeline_mode<synchronous>, transform_indices = @transform_2, window_bounds = array<i64: 16, 1>}, {pipeline_mode = #tpu.pipeline_mode<synchronous>, transform_indices = @transform_3, window_bounds = array<i64: 2, 16>}, {pipeline_mode = #tpu.pipeline_mode<synchronous>, transform_indices = @transform_4, window_bounds = array<i64: 2, 1>}, {transform_indices = @transform_5, window_bounds = array<i64: 2, 8>}]} {
    %c0 = arith.constant 0 : index
    %c0_0 = arith.constant 0 : index
    %0 = vector.load %arg1[%c0, %c0_0] : memref<3x8xf32, #tpu.memory_space<vmem>>, vector<3x8xf32>
    %c0_1 = arith.constant 0 : index
    %c0_2 = arith.constant 0 : index
    %1 = vector.load %arg2[%c0_1, %c0_2] : memref<16x3xf32, #tpu.memory_space<vmem>>, vector<16x3xf32>
    %c0_3 = arith.constant 0 : index
    %c0_4 = arith.constant 0 : index
    %2 = vector.load %arg4[%c0_3, %c0_4] : memref<2x16xf32, #tpu.memory_space<vmem>>, vector<2x16xf32>
    %cst = arith.constant dense<0.000000e+00> : vector<16x8xf32>
    %3 = tpu.matmul %1, %0, %cst {dimension_numbers = #tpu.dot_dimension_numbers<[1], [0], [0], [1], [0, 0, 1, 1], [], []>} : vector<16x3xf32>, vector<3x8xf32>, vector<16x8xf32> -> vector<16x8xf32>
    %c0_5 = arith.constant 0 : index
    %c0_6 = arith.constant 0 : index
    %4 = vector.load %arg3[%c0_5, %c0_6] : memref<16x1xf32, #tpu.memory_space<vmem>>, vector<16x1xf32>
    %5 = vector.broadcast %4 : vector<16x1xf32> to vector<16x8xf32>
    %6 = arith.addf %3, %5 : vector<16x8xf32>
    %cst_7 = arith.constant 0.000000e+00 : f32
    %7 = vector.broadcast %cst_7 : f32 to vector<16x8xf32>
    %8 = arith.maximumf %6, %7 : vector<16x8xf32>
    %cst_8 = arith.constant dense<0.000000e+00> : vector<2x8xf32>
    %9 = tpu.matmul %2, %8, %cst_8 {dimension_numbers = #tpu.dot_dimension_numbers<[1], [0], [0], [1], [0, 0, 1, 1], [], []>} : vector<2x16xf32>, vector<16x8xf32>, vector<2x8xf32> -> vector<2x8xf32>
    %c0_9 = arith.constant 0 : index
    %c0_10 = arith.constant 0 : index
    %10 = vector.load %arg5[%c0_9, %c0_10] : memref<2x1xf32, #tpu.memory_space<vmem>>, vector<2x1xf32>
    %11 = vector.broadcast %10 : vector<2x1xf32> to vector<2x8xf32>
    %12 = arith.addf %9, %11 : vector<2x8xf32>
    %c0_11 = arith.constant 0 : index
    %c0_12 = arith.constant 0 : index
    %13 = vector.load %arg6[%c0_11, %c0_12] : memref<2x8xf32, #tpu.memory_space<vmem>>, vector<2x8xf32>
    tpu.vector_store %arg6[%c0_11, %c0_12], %12 {strides = array<i32>} : memref<2x8xf32, #tpu.memory_space<vmem>>, vector<2x8xf32>,
    return
  }
  func.func @transform_0(%arg0: i32) -> (i32, i32) {
    %c0_i32 = arith.constant 0 : i32
    %c0_i32_0 = arith.constant 0 : i32
    return %c0_i32, %arg0 : i32, i32
  }
  func.func @transform_1(%arg0: i32) -> (i32, i32) {
    %c0_i32 = arith.constant 0 : i32
    %c0_i32_0 = arith.constant 0 : i32
    %c0_i32_1 = arith.constant 0 : i32
    return %c0_i32, %c0_i32_0 : i32, i32
  }
  func.func @transform_2(%arg0: i32) -> (i32, i32) {
    %c0_i32 = arith.constant 0 : i32
    %c0_i32_0 = arith.constant 0 : i32
    %c0_i32_1 = arith.constant 0 : i32
    return %c0_i32, %c0_i32_0 : i32, i32
  }
  func.func @transform_3(%arg0: i32) -> (i32, i32) {
    %c0_i32 = arith.constant 0 : i32
    %c0_i32_0 = arith.constant 0 : i32
    %c0_i32_1 = arith.constant 0 : i32
    return %c0_i32, %c0_i32_0 : i32, i32
  }
  func.func @transform_4(%arg0: i32) -> (i32, i32) {
    %c0_i32 = arith.constant 0 : i32
    %c0_i32_0 = arith.constant 0 : i32
    %c0_i32_1 = arith.constant 0 : i32
    return %c0_i32, %c0_i32_0 : i32, i32
  }
  func.func @transform_5(%arg0: i32) -> (i32, i32) {
    %c0_i32 = arith.constant 0 : i32
    %c0_i32_0 = arith.constant 0 : i32
    return %c0_i32, %arg0 : i32, i32
  }
}

</mosaic_0001>

<bundles_post_ra>
// kernel: tpu_custom_call.1
= control target key start
LH: loop header
LB: loop body
LE: loop exit
PB: predicated region body
PF: predicated region fallthrough
CT: control target
= control target key end

     0   :  { %vm44_vm0 = vcmask 1042432   ;;  %vm37_vm1 = vcmask 23552   ;;  %s329_s0 = inlined_call_operand.vmem [shape: f32[3,8], index: 0, kind: input, shape index: {}]   ;;  %s330_s1 = inlined_call_operand.vmem [shape: f32[16,3], index: 1, kind: input, shape index: {}]   ;;  %s331_s2 = inlined_call_operand.vmem [shape: f32[16,1], index: 2, kind: input, shape index: {}]   ;;  %s332_s3 = inlined_call_operand.vmem [shape: f32[2,16], index: 3, kind: input, shape index: {}]   ;;  %s333_s4 = inlined_call_operand.vmem [shape: f32[2,1], index: 4, kind: input, shape index: {}]   ;;  %s334_s5 = inlined_call_operand.hbm [shape: f32[2,8], index: 5, kind: output, shape index: {}]  }
   0x1   :  { %v21_v0 = vld [vmem:[%s329_s0] sm:$0x7]  ;;  %v23_v2 = vld [vmem:[%s330_s1 + $0x8] sm:$0xff] }
   0x2   :  { %v22_v1 = vld [vmem:[%s330_s1] sm:$0xff]  ;;  %231 = vmatprep.subr.msk.mxu0 %vm44_vm0, %v21_v0  ;;  %v26_v3 = vld [vmem:[%s331_s2 + $0x8] sm:$0xff] }
   0x3   :  { %233 = vmatprep.mubr.msk.f32.mxu0 %vm37_vm1, %v22_v1 }
   0x4   :  { %10 = vsyncpa [#allocation3], 0  ;;  %232 = vmatpush3.msk.msra.mxu0 %vm44_vm0, %v21_v0  ;;  %v271_v4 = vmov 0   ;;  %v25_v5 = vld [vmem:[%s331_s2] sm:$0xff]  ;;  %v272_v6 = vmov 0.0   ;;  %vm273_vm2 = vmmov 0  }
   0x5   :  { %247 = vset.pattern.permute.xlu0 %v271_v4  ;;  %234 = vmatmul.mubr.msk.f32.vlgmr.msra.gmra.mxu0 %vm37_vm1, %v23_v2  ;;  %v125_v7 = vld [vmem:[%s333_s4] sm:$0x3]  ;;  %vm131_vm3 = vcmask 130048   ;;  %s274_s4 = smov [#allocation2]   ;;  %vm205_vm4 = vcmask 58368  }
   0x6   :  { %34 = vperm.xlu0 %247, %v26_v3   ;;  %248 = vset.pattern.permute.xlu1 %v271_v4  ;;  %v24_v16 = vld [vmem:[%s332_s3] sm:$0x3]  ;;  %s213_s29 = sshll.u32 %s274_s4, 4  ;;  %s214_s29 = int_to_ptr.vmem [resolvable:$true] %s213_s29 }
   0x7   :  { %236 = vmatprep.subr.mxu1 %v272_v6  ;;  %240 = vmatprep.mubr.msk.f32.mxu1 %vm273_vm2, %v272_v6  ;;  %s249_s30 = scalar_lea.vmem %s214_s29, 32  ;;  %p254_p1 = scmp.lt.s32.totalorder %s214_s29, %s214_s29 }
   0x8   :  { %128 = vperm.xlu1 %248, %v125_v7   ;;  %p250_p0 = scmp.ne.s32.totalorder %s214_s29, %s249_s30  ;;  %p255_p2 = scmp.lt.s32.totalorder %s249_s30, %s249_s30 }
   0xa   :  { %29 = vperm.xlu0 %247, %v25_v5   ;;  %p256_p3 = por %p255_p2, %p254_p1 }
   0xc   :  { %p257_p4 = pnand %p256_p3, %p250_p0 }
  0x81   :  { %v35_v8 = vpop.permute.xlu0 %34 }
  0x83   :  { %v129_v17 = vpop.permute.xlu1 %128 }
  0x85   :  { %v30_v11 = vpop.permute.xlu0 %29 }
  0xc5   :  { %v235_v9 = vpop.f32.mrf.mxu0 }
  0xc6   :  { %v120_v10 = vadd.f32 %v235_v9, %v35_v8 }
  0xc7   :  { %v114_v12 = vpop.f32.mrf.mxu0 }
  0xc8   :  { %v124_v13 = vmax.f32 %v120_v10, 0.0  ;;  %v115_v14 = vadd.f32 %v114_v12, %v30_v11 }
  0xca   :  { %v123_v15 = vmax.f32 %v115_v14, 0.0  ;;  %237 = vmatpush3.msra.mxu1 %v124_v13 }
  0xcb   :  { %238 = vmatprep.subr.mxu1 %v272_v6 }
  0xcc   :  { %239 = vmatpush3.msra.mxu1 %v123_v15 }
  0xcd   :  { %241 = vmatmul.mubr.msk.f32.vlgmr.msra.gmra.mxu1 %vm131_vm3, %v24_v16 }
 0x18d   :  { %v201_v18 = vpop.f32.mrf.mxu1 }
 0x18e   :  { %v202_v19 = vadd.f32 %v201_v18, %v129_v17 }
 0x18f   :  { %v242_v20 = vpop.f32.mrf.mxu1 }
 0x190   :  { %206 = vst.msk [vmem:[#allocation2] sm:$0x3] %vm205_vm4, %v202_v19 }
 0x191   :  { %260 = shalt.err (!%p257_p4)
}
 0x192   :  { %216 = dma.vmem_to_hbm [thread:$0]  %s214_s29, 32, %s334_s5, [#allocation3]  }
 0x193   :  { %269 = dma.done.wait [#allocation3], 32  }
 0x194   :  { %270 = vsyncadd [#allocation3], 4294967264 }
 0x195   :  { %220 = vsyncpa [#allocation3], 1 }

</bundles_post_ra>
